<compile_context>
chip_gen: v6e
topology: v6e:2x2x1
jax: 0.10.0
libtpu: 0.0.40
codegen_flags: <defaults>
</compile_context>

<pallas_src>
import functools
import math

import jax
import jax.numpy as jnp
from jax import lax
from jax.experimental import pallas as pl
from jax.experimental.pallas import tpu as pltpu


# ---------------- generation-gated tile configuration ----------------

def _tile_config():
    # v5e / v6e: 128 MiB VMEM -> 512-class tiles, 64 MiB scoped-vmem limit.
    # v7x (or unknown): 64 MiB VMEM per TC -> 256-class tiles, 32 MiB limit.
    vmem = 0
    try:
        info = pltpu.get_tpu_info()
        vmem = int(getattr(info, "vmem_capacity_bytes", 0) or 0)
    except Exception:
        vmem = 0
    if vmem >= 100 * 1024 * 1024:
        return {"tm": 512, "tn": 512, "tk": 512,
                "vmem_limit": 64 * 1024 * 1024}
    return {"tm": 256, "tn": 256, "tk": 512,
            "vmem_limit": 32 * 1024 * 1024}


_CFG = _tile_config()


# ---------------- helpers ----------------

def _round_up(x, m):
    return ((x + m - 1) // m) * m


def _pad_to(x, shape):
    pads = [(0, s - d) for d, s in zip(x.shape, shape)]
    if any(p[1] for p in pads):
        return jnp.pad(x, pads)
    return x


def _nk_tiles(K, N):
    bn = min(_CFG["tn"], _round_up(N, 128))
    bk = min(_CFG["tk"], _round_up(K, 128))
    return bk, bn, _round_up(K, bk), _round_up(N, bn)


def prep_linear(w_kn, b):
    """Pad + cast weight (K,N)->bf16(Kp,Np) and bias ->f32(1,Np) ONCE at init."""
    K, N = w_kn.shape
    bk, bn, Kp, Np = _nk_tiles(K, N)
    return {
        "w": _pad_to(w_kn.astype(jnp.bfloat16), (Kp, Np)),
        "b": _pad_to(b.astype(jnp.float32), (Np,)).reshape(1, Np),
        "K": K,
        "N": N,
    }


# ---------------- tiled linear (x @ w + b [+extra] [relu] [residual+LN]) ----

def _linear_kernel(x_ref, w_ref, b_ref, *rest, activation, has_extra, has_ln,
                   n_valid, eps, single_k):
    rest = list(rest)
    e_ref = rest.pop(0) if has_extra else None
    if has_ln:
        g_ref = rest.pop(0)
        gb_ref = rest.pop(0)
    o_ref = rest.pop(0)
    acc_ref = None if single_k else rest.pop(0)

    def epilogue(acc):
        out = acc + b_ref[...]
        if activation == "relu":
            out = jnp.maximum(out, 0.0)
        # NOTE: ReLU is applied before the `extra` add; no call site uses both.
        if has_extra:
            out = out + e_ref[...].astype(jnp.float32)
        if has_ln:
            # Padded columns of `out` are exactly zero (zero-padded weights,
            # bias, residual), but the variance still needs masking.
            col = lax.broadcasted_iota(jnp.int32, out.shape, 1)
            valid = col < n_valid
            inv_n = 1.0 / n_valid
            mean = jnp.sum(out, axis=-1, keepdims=True) * inv_n
            diff = jnp.where(valid, out - mean, 0.0)
            var = jnp.sum(diff * diff, axis=-1, keepdims=True) * inv_n
            out = diff * lax.rsqrt(var + eps) * g_ref[...] + gb_ref[...]
        o_ref[...] = out.astype(o_ref.dtype)

    if single_k:
        epilogue(jnp.dot(x_ref[...], w_ref[...],
                         preferred_element_type=jnp.float32))
    else:
        @pl.when(pl.program_id(2) == 0)
        def _():
            acc_ref[...] = jnp.zeros_like(acc_ref)

        acc_ref[...] += jnp.dot(x_ref[...], w_ref[...],
                                preferred_element_type=jnp.float32)

        @pl.when(pl.program_id(2) == pl.num_programs(2) - 1)
        def _():
            epilogue(acc_ref[...])


def linear(x, p, *, activation=None, extra=None, ln=None, out_dtype=None,
           eps=1e-5):
    """x:(M,K). p from prep_linear. extra:(M,N) added in the epilogue (bf16 DMA).
    ln=(residual, gamma, beta): output = LayerNorm(residual + linear_out),
    fused into the matmul finalize when a single N-block covers the row."""
    M, K = x.shape
    N = p["N"]
    assert K == p["K"], (K, p["K"])
    assert extra is None or ln is None
    out_dtype = out_dtype or x.dtype

    bk, bn, Kp, Np = _nk_tiles(K, N)
    bm = min(_CFG["tm"], _round_up(M, 8))
    Mp = _round_up(M, bm)
    gm, gn, gk = Mp // bm, Np // bn, Kp // bk

    fuse_ln = ln is not None and gn == 1
    if ln is not None and not fuse_ln:
        # LN needs the whole row in one block; fall back to a separate pass.
        residual, gamma, beta = ln
        y = linear(x, p, activation=activation, out_dtype=out_dtype)
        return add_layernorm(residual, y, gamma, beta, eps=eps,
                             out_dtype=out_dtype)

    if fuse_ln:
        residual, gamma, beta = ln
        extra = residual  # residual add happens in the fused epilogue

    xp = _pad_to(x.astype(jnp.bfloat16), (Mp, Kp))

    # Grid ordering: put the larger of the M/N tile axes first so a real
    # 'parallel' axis exists for megacore even when M fits one block (decode).
    if gm >= gn:
        grid = (gm, gn, gk)
        ix = lambda i, j, k: (i, k)
        iw = lambda i, j, k: (k, j)
        ib = lambda i, j, k: (0, j)
        io = lambda i, j, k: (i, j)
    else:
        grid = (gn, gm, gk)
        ix = lambda j, i, k: (i, k)
        iw = lambda j, i, k: (k, j)
        ib = lambda j, i, k: (0, j)
        io = lambda j, i, k: (i, j)

    in_specs = [
        pl.BlockSpec((bm, bk), ix),
        pl.BlockSpec((bk, bn), iw),
        pl.BlockSpec((1, bn), ib),
    ]
    inputs = [xp, p["w"], p["b"]]

    has_extra = extra is not None
    if has_extra:
        in_specs.append(pl.BlockSpec((bm, bn), io))
        inputs.append(_pad_to(extra.astype(jnp.bfloat16), (Mp, Np)))
    if fuse_ln:
        # gamma/beta are tiny (D,) vectors; zero-padding them here is cheap.
        in_specs.append(pl.BlockSpec((1, bn), ib))
        in_specs.append(pl.BlockSpec((1, bn), ib))
        inputs.append(_pad_to(gamma.astype(jnp.float32), (Np,)).reshape(1, Np))
        inputs.append(_pad_to(beta.astype(jnp.float32), (Np,)).reshape(1, Np))

    single_k = gk == 1
    kernel = functools.partial(
        _linear_kernel, activation=activation, has_extra=has_extra,
        has_ln=fuse_ln, n_valid=N, eps=eps, single_k=single_k)

    out = pl.pallas_call(
        kernel,
        out_shape=jax.ShapeDtypeStruct((Mp, Np), out_dtype),
        grid=grid,
        in_specs=in_specs,
        out_specs=pl.BlockSpec((bm, bn), io),
        scratch_shapes=([] if single_k
                        else [pltpu.VMEM((bm, bn), jnp.float32)]),
        compiler_params=pltpu.CompilerParams(
            dimension_semantics=("parallel", "parallel", "arbitrary"),
            vmem_limit_bytes=_CFG["vmem_limit"]),
    )(*inputs)

    if Mp != M or Np != N:
        out = out[:M, :N]
    return out


# ---------------- fused residual-add + LayerNorm (fallback path) ------------

def _add_layernorm_kernel(x_ref, y_ref, g_ref, b_ref, o_ref, *, eps):
    h = x_ref[...].astype(jnp.float32) + y_ref[...].astype(jnp.float32)
    mean = jnp.mean(h, axis=-1, keepdims=True)
    var = jnp.mean((h - mean) ** 2, axis=-1, keepdims=True)
    out = (h - mean) * lax.rsqrt(var + eps) * g_ref[...] + b_ref[...]
    o_ref[...] = out.astype(o_ref.dtype)


def add_layernorm(x, y, gamma, beta, eps=1e-5, out_dtype=None, tm=512):
    M, D = x.shape
    out_dtype = out_dtype or x.dtype
    bm = min(tm, _round_up(M, 8))
    Mp = _round_up(M, bm)
    xp = _pad_to(x, (Mp, D))
    yp = _pad_to(y, (Mp, D))

    out = pl.pallas_call(
        functools.partial(_add_layernorm_kernel, eps=eps),
        out_shape=jax.ShapeDtypeStruct((Mp, D), out_dtype),
        grid=(Mp // bm,),
        in_specs=[
            pl.BlockSpec((bm, D), lambda i: (i, 0)),
            pl.BlockSpec((bm, D), lambda i: (i, 0)),
            pl.BlockSpec((1, D), lambda i: (0, 0)),
            pl.BlockSpec((1, D), lambda i: (0, 0)),
        ],
        out_specs=pl.BlockSpec((bm, D), lambda i: (i, 0)),
        compiler_params=pltpu.CompilerParams(
            dimension_semantics=("parallel",)),
    )(xp, yp, gamma.reshape(1, D).astype(jnp.float32),
      beta.reshape(1, D).astype(jnp.float32))

    return out[:M] if Mp != M else out


# ---------------- flash-style causal multi-head attention ----------------

def _flash_kernel(q_ref, k_ref, v_ref, o_ref, m_sc, l_sc, acc_sc, *, scale):
    qi = pl.program_id(1)
    ki = pl.program_id(2)

    @pl.when(ki == 0)
    def _():
        m_sc[...] = jnp.full_like(m_sc, -1e30)
        l_sc[...] = jnp.zeros_like(l_sc)
        acc_sc[...] = jnp.zeros_like(acc_sc)

    def process(masked):
        q = q_ref[0] * scale             # pre-scale q (tq x dh), not s (tq x tk)
        k = k_ref[0]
        v = v_ref[0]
        s = lax.dot_general(q, k, (((1,), (1,)), ((), ())),
                            preferred_element_type=jnp.float32)
        if masked:
            # Only the diagonal tile needs a mask (tq == tk, tiles aligned).
            tq, tk = s.shape
            row = lax.broadcasted_iota(jnp.int32, (tq, tk), 0)
            col = lax.broadcasted_iota(jnp.int32, (tq, tk), 1)
            s = jnp.where(col > row, -1e30, s)
        m_new = jnp.maximum(m_sc[...], jnp.max(s, axis=-1, keepdims=True))
        alpha = jnp.exp(m_sc[...] - m_new)
        p = jnp.exp(s - m_new)
        l_sc[...] = alpha * l_sc[...] + jnp.sum(p, axis=-1, keepdims=True)
        acc_sc[...] = alpha * acc_sc[...] + jnp.dot(
            p.astype(v.dtype), v, preferred_element_type=jnp.float32)
        m_sc[...] = m_new

    @pl.when(ki < qi)        # strictly below the diagonal: no mask work
    def _():
        process(False)

    @pl.when(ki == qi)       # diagonal tile: in-tile causal mask
    def _():
        process(True)

    @pl.when(ki == pl.num_programs(2) - 1)
    def _():
        o_ref[0] = (acc_sc[...] *
                    pl.reciprocal(l_sc[...], approx=True)).astype(o_ref.dtype)


def mha_attention(q, k, v):
    """q,k,v: (B*H, S, dh) -> (B*H, S, dh), causal online-softmax attention."""
    BH, S, dh = q.shape
    t = min(128, _round_up(S, 8))
    Sp = _round_up(S, t)
    dhp = max(128, _round_up(dh, 128))    # lane-dense stores / full MXU operand
    qp = _pad_to(q, (BH, Sp, dhp))
    kp = _pad_to(k, (BH, Sp, dhp))
    vp = _pad_to(v, (BH, Sp, dhp))

    kernel = functools.partial(_flash_kernel, scale=1.0 / math.sqrt(dh))
    # Clamp the kv block index: tiles fully above the causal diagonal repeat
    # the previous block index, so Pallas skips their DMA entirely.
    kv_spec = pl.BlockSpec((1, t, dhp),
                           lambda b, qi, ki: (b, jnp.minimum(ki, qi), 0))
    q_spec = pl.BlockSpec((1, t, dhp), lambda b, qi, ki: (b, qi, 0))

    # TODO(synk): for tq != tk (larger q tiles) the mask/skip logic needs
    # global offsets; kept tq == tk for the aligned-diagonal safety guarantee.
    out = pl.pallas_call(
        kernel,
        out_shape=jax.ShapeDtypeStruct((BH, Sp, dhp), q.dtype),
        grid=(BH, Sp // t, Sp // t),
        in_specs=[q_spec, kv_spec, kv_spec],
        out_specs=pl.BlockSpec((1, t, dhp), lambda b, qi, ki: (b, qi, 0)),
        scratch_shapes=[pltpu.VMEM((t, 1), jnp.float32),
                        pltpu.VMEM((t, 1), jnp.float32),
                        pltpu.VMEM((t, dhp), jnp.float32)],
        compiler_params=pltpu.CompilerParams(
            dimension_semantics=("parallel", "parallel", "arbitrary")),
    )(qp, kp, vp)

    if Sp != S or dhp != dh:
        out = out[:, :S, :dh]
    return out


# ---------------- model (JAX glue around the kernels) ----------------

def init_params(key, vocab_size, embedding_dim, d_model, n_head, n_layer,
                dim_ff, max_len=5000):
    """Deterministic synthetic parameter init (GloVe load replaced by random).
    Matmul weights stored PRE-TRANSPOSED (in,out), padded + bf16, once."""
    def rnd(k, shape, scale=0.02):
        return scale * jax.random.normal(k, shape, dtype=jnp.float32)

    keys = iter(jax.random.split(key, 8 + 8 * n_layer))
    params = {
        "n_head": n_head,
        "embedding": rnd(next(keys), (vocab_size, embedding_dim), 0.1),
        "pos_emb": rnd(next(keys), (max_len, d_model)),
        "proj": prep_linear(rnd(next(keys), (embedding_dim, d_model)),
                            jnp.zeros((d_model,), jnp.float32)),
        "out": prep_linear(rnd(next(keys), (d_model, vocab_size)),
                           jnp.zeros((vocab_size,), jnp.float32)),
        "layers": [],
    }
    for _ in range(n_layer):
        params["layers"].append({
            "in_proj": prep_linear(rnd(next(keys), (d_model, 3 * d_model)),
                                   jnp.zeros((3 * d_model,), jnp.float32)),
            "out_proj": prep_linear(rnd(next(keys), (d_model, d_model)),
                                    jnp.zeros((d_model,), jnp.float32)),
            "lin1": prep_linear(rnd(next(keys), (d_model, dim_ff)),
                                jnp.zeros((dim_ff,), jnp.float32)),
            "lin2": prep_linear(rnd(next(keys), (dim_ff, d_model)),
                                jnp.zeros((d_model,), jnp.float32)),
            "norm1_g": jnp.ones((d_model,), jnp.float32),
            "norm1_b": jnp.zeros((d_model,), jnp.float32),
            "norm2_g": jnp.ones((d_model,), jnp.float32),
            "norm2_b": jnp.zeros((d_model,), jnp.float32),
        })
    return params


def transformer_lm_forward(params, ids):
    B, S = ids.shape
    D = params["proj"]["N"]
    H = params["n_head"]
    dh = D // H
    V = params["out"]["N"]

    # embedding lookup (gather) -- XLA glue
    emb = jnp.take(params["embedding"], ids, axis=0)            # (B, S, E) f32
    E = emb.shape[-1]

    # fused: embedding projection + learned positional encoding add (bf16 extra)
    pos = jnp.broadcast_to(params["pos_emb"][:S][None], (B, S, D)).reshape(B * S, D)
    x = linear(emb.reshape(B * S, E), params["proj"],
               extra=pos.astype(jnp.bfloat16), out_dtype=jnp.bfloat16)
    # self.dropout(x): inference (eval) semantics -> identity

    def split_heads(t):
        # TODO(synk): head split/merge stays as XLA transpose glue; dh < 128
        # prevents folding it into the attention BlockSpec index_map.
        return t.reshape(B, S, H, dh).transpose(0, 2, 1, 3).reshape(B * H, S, dh)

    for lp in params["layers"]:
        # --- self attention block (post-LN, as in nn.TransformerEncoderLayer) ---
        qkv = linear(x, lp["in_proj"], out_dtype=jnp.bfloat16)
        q, k, v = jnp.split(qkv, 3, axis=-1)
        attn = mha_attention(split_heads(q), split_heads(k), split_heads(v))
        attn = attn.reshape(B, H, S, dh).transpose(0, 2, 1, 3).reshape(B * S, D)
        # out_proj matmul with residual-add + LayerNorm fused into its finalize
        x = linear(attn, lp["out_proj"],
                   ln=(x, lp["norm1_g"], lp["norm1_b"]), out_dtype=jnp.bfloat16)

        # --- feed-forward block (ReLU, default dim_feedforward=2048) ---
        ff = linear(x, lp["lin1"], activation="relu", out_dtype=jnp.bfloat16)
        x = linear(ff, lp["lin2"],
                   ln=(x, lp["norm2_g"], lp["norm2_b"]), out_dtype=jnp.bfloat16)

    logits = linear(x, params["out"], out_dtype=jnp.float32)
    return logits.reshape(B, S, V)


if __name__ == "__main__":
    VOCAB = 64
    EMB_DIM = 32
    D_MODEL = 32
    N_HEAD = 4
    N_LAYER = 2
    DIM_FF = 2048        # nn.TransformerEncoderLayer default
    B, S = 2, 8

    key = jax.random.PRNGKey(0)
    pkey, ikey = jax.random.split(key)
    params = init_params(pkey, VOCAB, EMB_DIM, D_MODEL, N_HEAD, N_LAYER,
                         DIM_FF, max_len=5000)
    ids = jax.random.randint(ikey, (B, S), 0, VOCAB, dtype=jnp.int32)

    logits = transformer_lm_forward(params, ids)
    jax.block_until_ready(logits)
    assert logits.shape == (B, S, VOCAB), logits.shape
    assert bool(jnp.all(jnp.isfinite(logits)))
    print("KERNEL_OK")
</pallas_src>

<mosaic_0001>
module attributes {stable_mosaic.version = 11 : i64} {
  func.func @_linear_kernel(%arg0: i32, %arg1: i32, %arg2: i32, %arg3: memref<16x128xbf16, #tpu.memory_space<vmem>>, %arg4: memref<128x128xbf16, #tpu.memory_space<vmem>>, %arg5: memref<1x128xf32, #tpu.memory_space<vmem>>, %arg6: memref<16x128xbf16, #tpu.memory_space<vmem>>, %arg7: memref<16x128xbf16, #tpu.memory_space<vmem>>) attributes {dimension_semantics = [#tpu.dimension_semantics<parallel>, #tpu.dimension_semantics<parallel>, #tpu.dimension_semantics<arbitrary>], iteration_bounds = array<i64: 1, 1, 1>, scalar_prefetch = 0 : i64, scratch_operands = 0 : i64, tpu.core_type = #tpu.core_type<tc>, window_params = [{transform_indices = @transform_0, window_bounds = array<i64: 16, 128>}, {transform_indices = @transform_1, window_bounds = array<i64: 128, 128>}, {transform_indices = @transform_2, window_bounds = array<i64: 1, 128>}, {transform_indices = @transform_3, window_bounds = array<i64: 16, 128>}, {transform_indices = @transform_4, window_bounds = array<i64: 16, 128>}]} {
    %c0 = arith.constant 0 : index
    %c0_0 = arith.constant 0 : index
    %0 = vector.load %arg3[%c0, %c0_0] : memref<16x128xbf16, #tpu.memory_space<vmem>>, vector<16x128xbf16>
    %c0_1 = arith.constant 0 : index
    %c0_2 = arith.constant 0 : index
    %1 = vector.load %arg4[%c0_1, %c0_2] : memref<128x128xbf16, #tpu.memory_space<vmem>>, vector<128x128xbf16>
    %cst = arith.constant dense<0.000000e+00> : vector<16x128xf32>
    %2 = tpu.matmul %0, %1, %cst {dimension_numbers = #tpu.dot_dimension_numbers<[1], [0], [0], [1], [0, 0, 1, 1], [], []>} : vector<16x128xbf16>, vector<128x128xbf16>, vector<16x128xf32> -> vector<16x128xf32>
    %c0_3 = arith.constant 0 : index
    %c0_4 = arith.constant 0 : index
    %3 = vector.load %arg5[%c0_3, %c0_4] : memref<1x128xf32, #tpu.memory_space<vmem>>, vector<1x128xf32>
    %4 = vector.broadcast %3 : vector<1x128xf32> to vector<16x128xf32>
    %5 = arith.addf %2, %4 : vector<16x128xf32>
    %c0_5 = arith.constant 0 : index
    %c0_6 = arith.constant 0 : index
    %6 = vector.load %arg6[%c0_5, %c0_6] : memref<16x128xbf16, #tpu.memory_space<vmem>>, vector<16x128xbf16>
    %7 = arith.extf %6 : vector<16x128xbf16> to vector<16x128xf32>
    %8 = arith.addf %5, %7 : vector<16x128xf32>
    %9 = arith.truncf %8 : vector<16x128xf32> to vector<16x128xbf16>
    %c0_7 = arith.constant 0 : index
    %c0_8 = arith.constant 0 : index
    %10 = vector.load %arg7[%c0_7, %c0_8] : memref<16x128xbf16, #tpu.memory_space<vmem>>, vector<16x128xbf16>
    tpu.vector_store %arg7[%c0_7, %c0_8], %9 {strides = array<i32>} : memref<16x128xbf16, #tpu.memory_space<vmem>>, vector<16x128xbf16>,
    return
  }
  func.func @transform_0(%arg0: i32, %arg1: i32, %arg2: i32) -> (i32, i32) {
    %c0_i32 = arith.constant 0 : i32
    return %arg0, %arg2 : i32, i32
  }
  func.func @transform_1(%arg0: i32, %arg1: i32, %arg2: i32) -> (i32, i32) {
    %c0_i32 = arith.constant 0 : i32
    return %arg2, %arg1 : i32, i32
  }
  func.func @transform_2(%arg0: i32, %arg1: i32, %arg2: i32) -> (i32, i32) {
    %c0_i32 = arith.constant 0 : i32
    %c0_i32_0 = arith.constant 0 : i32
    return %c0_i32, %arg1 : i32, i32
  }
  func.func @transform_3(%arg0: i32, %arg1: i32, %arg2: i32) -> (i32, i32) {
    %c0_i32 = arith.constant 0 : i32
    return %arg0, %arg1 : i32, i32
  }
  func.func @transform_4(%arg0: i32, %arg1: i32, %arg2: i32) -> (i32, i32) {
    %c0_i32 = arith.constant 0 : i32
    return %arg0, %arg1 : i32, i32
  }
}

</mosaic_0001>

<bundles_post_ra>
// kernel: tpu_custom_call.1
= control target key start
LH: loop header
LB: loop body
LE: loop exit
PB: predicated region body
PF: predicated region fallthrough
CT: control target
= control target key end

     0   :  { %9 = vsyncpa [#allocation3], 0  ;;  %s429_s0 = inlined_call_operand.hbm [shape: bf16[16,128], index: 0, kind: input, shape index: {}]   ;;  %s430_s1 = inlined_call_operand.hbm [shape: bf16[128,128], index: 1, kind: input, shape index: {}]   ;;  %s431_s2 = inlined_call_operand.vmem [shape: f32[1,128], index: 2, kind: input, shape index: {}]   ;;  %s432_s3 = inlined_call_operand.hbm [shape: bf16[16,128], index: 3, kind: input, shape index: {}]   ;;  %s433_s4 = inlined_call_operand.hbm [shape: bf16[16,128], index: 4, kind: output, shape index: {}]  }
   0x1   :  { %10 = vsyncpa [#allocation6], 0 }
   0x2   :  { %11 = vsyncpa [#allocation4], 0  ;;  %s369_s15 = smov [#allocation5]   ;;  %s370_s17 = smov [#allocation2]  }
   0x3   :  { %s29_s16 = sshll.u32 %s369_s15, 4  ;;  %s17_s18 = sshll.u32 %s370_s17, 4  ;;  %s30_s16 = int_to_ptr.vmem [resolvable:$true] %s29_s16  ;;  %s18_s18 = int_to_ptr.vmem [resolvable:$true] %s17_s18 }
   0x4   :  { %s291_s19 = scalar_lea.vmem %s30_s16, 1024  ;;  %p296_p1 = scmp.lt.s32.totalorder %s30_s16, %s30_s16 }
   0x5   :  { %p292_p0 = scmp.ne.s32.totalorder %s30_s16, %s291_s19  ;;  %p297_p2 = scmp.lt.s32.totalorder %s291_s19, %s291_s19 }
   0x7   :  { %p298_p3 = por %p297_p2, %p296_p1 }
   0x9   :  { %p299_p4 = pnand %p298_p3, %p292_p0 }
   0xb   :  { %302 = shalt.err (!%p299_p4)
}
   0xc   :  { %s371_s20 = smov 64   ;;  %s372_s21 = smov 4  }
   0xd   :  { %35 = dma.hbm_to_vmem [thread:$0]  %s430_s1, 1024, %s30_s16, [#allocation6], %s371_s20, %s371_s20, %s372_s21  }
   0xe   :  { %s311_s24 = scalar_lea.vmem %s18_s18, 128  ;;  %p316_p6 = scmp.lt.s32.totalorder %s18_s18, %s18_s18 }
   0xf   :  { %p312_p5 = scmp.ne.s32.totalorder %s18_s18, %s311_s24  ;;  %p317_p7 = scmp.lt.s32.totalorder %s311_s24, %s311_s24 }
  0x11   :  { %p318_p8 = por %p317_p7, %p316_p6 }
  0x13   :  { %p319_p9 = pnand %p318_p8, %p312_p5 }
  0x15   :  { %322 = shalt.err (!%p319_p9)
}
  0x16   :  { %23 = dma.hbm_to_vmem [thread:$0]  %s429_s0, 128, %s18_s18, [#allocation3], %s371_s20, %s371_s20, %s372_s21  }
  0x17   :  { %s373_s27 = smov [#allocation7]  }
  0x18   :  { %s43_s28 = sshll.u32 %s373_s27, 4  ;;  %s44_s28 = int_to_ptr.vmem [resolvable:$true] %s43_s28 }
  0x19   :  { %s331_s29 = scalar_lea.vmem %s44_s28, 128  ;;  %p336_p11 = scmp.lt.s32.totalorder %s44_s28, %s44_s28 }
  0x1a   :  { %p332_p10 = scmp.ne.s32.totalorder %s44_s28, %s331_s29  ;;  %p337_p12 = scmp.lt.s32.totalorder %s331_s29, %s331_s29 }
  0x1c   :  { %p338_p13 = por %p337_p12, %p336_p11 }
  0x1e   :  { %p339_p0 = pnand %p338_p13, %p332_p10 }
  0x20   :  { %342 = shalt.err (!%p339_p0)
}
  0x21   :  { %49 = dma.hbm_to_vmem [thread:$0]  %s432_s3, 128, %s44_s28, [#allocation6], %s371_s20, %s371_s20, %s372_s21  }
  0x22   :  { %363 = dma.done.wait [#allocation3], 128  }
  0x23   :  { %364 = vsyncadd [#allocation3], 4294967168 }
  0x24   :  { %365 = dma.done.wait [#allocation6], 1152  }
  0x25   :  { %366 = vsyncadd [#allocation6], 4294966144  ;;  %v374_v0 = vmov 0.0   ;;  %vm375_vm0 = vmmov 0   ;;  %v274_v1 = vld [vmem:[#allocation5 + $0x38] sm:$0xff]   ;;  %v275_v2 = vld [vmem:[#allocation5 + $0x30] sm:$0xff]  }
  0x26   :  { %246 = vmatprep.subr.bf16.mxu0 %v374_v0  ;;  %262 = vmatprep.mubr.msk.bf16.mxu0 %vm375_vm0, %v374_v0  ;;  %v276_v3 = vld [vmem:[#allocation5 + $0x28] sm:$0xff]   ;;  %v277_v4 = vld [vmem:[#allocation5 + $0x20] sm:$0xff]   ;;  %v278_v5 = vld [vmem:[#allocation5 + $0x18] sm:$0xff]   ;;  %s376_s5 = smov [#allocation8]  }
  0x27   :  { %247 = vmatpush3.bf16.msra.mxu0 %v274_v1  ;;  %v279_v6 = vld [vmem:[#allocation5 + $0x10] sm:$0xff]   ;;  %v280_v7 = vld [vmem:[#allocation5 + $0x8] sm:$0xff]   ;;  %v281_v8 = vld [vmem:[#allocation5] sm:$0xff]   ;;  %s201_s6 = sshll.u32 %s376_s5, 4  ;;  %s202_s6 = int_to_ptr.vmem [resolvable:$true] %s201_s6 }
  0x28   :  { %248 = vmatprep.subr.bf16.mxu0 %v374_v0  ;;  %v282_v9 = vld [vmem:[#allocation2] sm:$0xff]   ;;  %v229_v12 = vld [vmem:[#allocation7] sm:$0xff]   ;;  %s343_s7 = scalar_lea.vmem %s202_s6, 128  ;;  %p348_p2 = scmp.lt.s32.totalorder %s202_s6, %s202_s6 }
  0x29   :  { %v214_v10 = vld [vmem:[%s431_s2] ss:$0 sm:$0xff]  ;;  %v230_v15 = vunpack.c.l.bf16 %v229_v12  ;;  %v231_v16 = vunpack.c.h.bf16 %v229_v12  ;;  %p344_p1 = scmp.ne.s32.totalorder %s202_s6, %s343_s7  ;;  %p349_p3 = scmp.lt.s32.totalorder %s343_s7, %s343_s7 }
  0x2b   :  { %249 = vmatpush3.bf16.msra.mxu0 %v275_v2  ;;  %p350_p4 = por %p349_p3, %p348_p2 }
  0x2c   :  { %250 = vmatprep.subr.bf16.mxu0 %v374_v0 }
  0x2d   :  { %p351_p5 = pnand %p350_p4, %p344_p1 }
  0x2f   :  { %251 = vmatpush3.bf16.msra.mxu0 %v276_v3 }
  0x30   :  { %252 = vmatprep.subr.bf16.mxu0 %v374_v0 }
  0x33   :  { %253 = vmatpush3.bf16.msra.mxu0 %v277_v4 }
  0x34   :  { %254 = vmatprep.subr.bf16.mxu0 %v374_v0 }
  0x37   :  { %255 = vmatpush3.bf16.msra.mxu0 %v278_v5 }
  0x38   :  { %256 = vmatprep.subr.bf16.mxu0 %v374_v0 }
  0x3b   :  { %257 = vmatpush3.bf16.msra.mxu0 %v279_v6 }
  0x3c   :  { %258 = vmatprep.subr.bf16.mxu0 %v374_v0 }
  0x3f   :  { %259 = vmatpush3.bf16.msra.mxu0 %v280_v7 }
  0x40   :  { %260 = vmatprep.subr.bf16.mxu0 %v374_v0 }
  0x43   :  { %261 = vmatpush3.bf16.msra.mxu0 %v281_v8 }
  0x46   :  { %263 = vmatmul.mubr.bf16.vlgmr.msra.gmra.mxu0 %v282_v9 }
 0x106   :  { %v173_v11 = vpop.f32.mrf.mxu0 }
 0x107   :  { %v174_v14 = vadd.f32 %v214_v10, %v173_v11 }
 0x108   :  { %v264_v13 = vpop.f32.mrf.mxu0 }
 0x109   :  { %v184_v20 = vadd.f32 %v230_v15, %v174_v14 }
 0x10a   :  { %v176_v17 = vpop.f32.mrf.mxu0 }
 0x10b   :  { %v177_v18 = vadd.f32 %v214_v10, %v176_v17 }
 0x10c   :  { %v265_v19 = vpop.f32.mrf.mxu0 }
 0x10d   :  { %v185_v21 = vadd.f32 %v231_v16, %v177_v18 }
 0x10f   :  { %v235_v22 = vpack.c.bf16 %v185_v21, %v184_v20 }
 0x111   :  { %236 = vst [vmem:[#allocation8] sm:$0xff] %v235_v22  }
 0x112   :  { %354 = shalt.err (!%p351_p5)
}
 0x113   :  { %207 = dma.vmem_to_hbm [thread:$0]  %s202_s6, 128, %s433_s4, [#allocation4], %s371_s20, %s371_s20, %s372_s21  }
 0x114   :  { %367 = dma.done.wait [#allocation4], 128  }
 0x115   :  { %368 = vsyncadd [#allocation4], 4294967168 }
 0x116   :  { %211 = vsyncpa [#allocation3], 1 }
 0x117   :  { %212 = vsyncpa [#allocation6], 1 }
 0x118   :  { %213 = vsyncpa [#allocation4], 1 }

</bundles_post_ra>
